<compile_context>
chip_gen: v6e
topology: v6e:2x2x1
jax: 0.10.0
libtpu: 0.0.40
codegen_flags: <defaults>
</compile_context>

<pallas_src>
import jax
import jax.numpy as jnp
from jax import lax
from jax.experimental import pallas as pl
from jax.experimental.pallas import tpu as pltpu


_VMEM_LIMIT_BYTES = 32 * 1024 * 1024   # <= default scoped limit on v6e/v7x; safe raise on v5e (128 MiB phys)
_TILE_BUDGET_BYTES = 24 * 1024 * 1024  # leave headroom for weights, accumulators, compiler scratch


# --------------------------------------------------------------------------------------
# Kernels
# --------------------------------------------------------------------------------------
def _spectral_project_kernel(coefs_ref, mass_ref, x_ref, evecs_ref, xdspec_ref, acc_ref):
    """Pass 1: x_dspec = coefs * (evecs^T @ (mass * x)), reduction over node row-blocks."""
    @pl.when(pl.program_id(0) == 0)
    def _init():
        acc_ref[...] = jnp.zeros_like(acc_ref)

    # to_basis contribution of this row tile:  evecs_tile^T @ (mass_tile * x_tile)  -> [K, C]
    xm = x_ref[...].astype(jnp.float32) * mass_ref[...].astype(jnp.float32)        # [TN, C], f32
    acc_ref[...] += lax.dot_general(
        evecs_ref[...].astype(jnp.bfloat16), xm.astype(jnp.bfloat16),
        (((0,), (0,)), ((), ())), preferred_element_type=jnp.float32)

    @pl.when(pl.program_id(0) == pl.num_programs(0) - 1)
    def _finalize():
        # Spectral-domain fusion: apply the Kronecker diffusion coefficients on the small [K, C] tensor.
        xdspec_ref[...] = (coefs_ref[...].astype(jnp.float32) * acc_ref[...]).astype(xdspec_ref.dtype)


def _expand_mlp_kernel(x_ref, evecs_ref, xdspec_ref, *rest):
    """Pass 2 (per row block): x_diffuse = evecs @ x_dspec, concat-free MiniMLP, residual add.

    rest = (w0a, w0b, b0, w1, b1, ..., o_ref)  with_MLP=True
         = (o_ref,)                            with_MLP=False
    """
    o_ref = rest[-1]
    params = rest[:-1]

    x_f32 = x_ref[...].astype(jnp.float32)
    # x_diffuse tile: bf16 MXU operands, f32 accumulation.
    xd = jnp.dot(evecs_ref[...].astype(jnp.bfloat16),
                 xdspec_ref[...].astype(jnp.bfloat16),
                 preferred_element_type=jnp.float32)                                # [TN, C]

    if len(params) == 0:                       # with_MLP=False:  x0_out = x_diffuse + x_in
        o_ref[...] = (xd + x_f32).astype(o_ref.dtype)
        return

    w0a_ref, w0b_ref, b0_ref = params[0], params[1], params[2]
    # First MLP linear without materializing the concat:
    #   cat([x, xd], -1) @ W0 = x @ W0[:C] + xd @ W0[C:]
    h = (jnp.dot(x_f32.astype(jnp.bfloat16), w0a_ref[...].astype(jnp.bfloat16),
                 preferred_element_type=jnp.float32)
         + jnp.dot(xd.astype(jnp.bfloat16), w0b_ref[...].astype(jnp.bfloat16),
                   preferred_element_type=jnp.float32)
         + b0_ref[...].astype(jnp.float32))

    for j in range(3, len(params), 2):
        w_ref, b_ref = params[j], params[j + 1]
        h = jnp.maximum(h, 0.0)                # ReLU after every non-last linear
        # TODO(synk): training-mode nn.Dropout(p=0.5) before this linear omitted (eval() semantics).
        h = (jnp.dot(h.astype(jnp.bfloat16), w_ref[...].astype(jnp.bfloat16),
                     preferred_element_type=jnp.float32)
             + b_ref[...].astype(jnp.float32))

    # x0_out = mlp(cat(x, x_diffuse)) + x_in
    o_ref[...] = (h + x_f32).astype(o_ref.dtype)


# --------------------------------------------------------------------------------------
# Wrapper
# --------------------------------------------------------------------------------------
def _diffusion_coefs(diffusion_time, evals_list, C, single_t):
    """Kronecker-product diffusion coefficients [K_total, C] (vectorized over channels)."""
    P = len(evals_list)
    if single_t:
        t = jnp.broadcast_to(jnp.reshape(diffusion_time, (P, 1)).astype(jnp.float32), (P, C))
    else:
        t = jnp.reshape(diffusion_time, (P, C)).astype(jnp.float32)
    coefs = jnp.exp(-evals_list[0].astype(jnp.float32)[:, None] * t[0][None, :])     # [k0, C]
    for p in range(1, P):
        e_p = jnp.exp(-evals_list[p].astype(jnp.float32)[:, None] * t[p][None, :])   # [kp, C]
        coefs = (coefs[:, None, :] * e_p[None, :, :]).reshape(-1, C)                 # kron along rows
    return coefs


def _pick_row_tile(N, K, C, elem_bytes=4, budget_bytes=_TILE_BUDGET_BYTES):
    """Largest row tile TN (multiple of 8, divides N) whose double-buffered streams fit the VMEM budget."""
    if N % 8 != 0:
        return N                                  # single full block (block == array dims is always legal)
    per_row = elem_bytes * (2 * C + K)            # x row + out row + evecs row (heaviest kernel)
    cap = max(8, budget_bytes // (2 * per_row))   # x2: Pallas double-buffers each streamed operand
    tn = 8
    for cand in range(8, N + 1, 8):
        if N % cand == 0 and cand <= cap:
            tn = cand
    return tn


def cpgnn_block_v2_forward(x_in, mass, evals_list, evecs, diffusion_time,
                           mlp_weights=(), mlp_biases=(), *,
                           single_t=False, row_tile=None):
    """CPGNN_block_v2.forward (eval mode, 'spectral'). mlp_weights empty <=> with_MLP=False.

    MLP weights are in "applied" layout: h_{i+1} = h_i @ W_i + b_i, W_0 has shape [2*C, hidden0].
    Big arrays (x_in, evecs) are passed through in the caller's dtype and cast per-tile in-kernel;
    passing them as bf16 halves HBM traffic with no code change.
    """
    N, C = x_in.shape
    K = evecs.shape[1]
    assert evecs.shape[0] == N and mass.shape == (N,)
    if mlp_weights:
        assert len(mlp_weights) == len(mlp_biases)
        assert mlp_weights[0].shape[0] == 2 * C, "first MLP layer must take cat([x, x_diffuse])"
        assert mlp_weights[-1].shape[-1] == C, "last MLP layer must emit C_width channels"

    coefs = _diffusion_coefs(diffusion_time, evals_list, C, single_t)   # [K, C], tiny -> plain XLA
    assert coefs.shape == (K, C)
    mass2 = jnp.reshape(mass, (N, 1))

    TN = _pick_row_tile(N, K, C) if row_tile is None else int(row_tile)
    assert N % TN == 0, f"row tile {TN} must divide N={N}"
    grid = (N // TN,)

    cparams_reduce = pltpu.CompilerParams(
        dimension_semantics=("arbitrary",),          # reduction over row blocks -> resident accumulator
        vmem_limit_bytes=_VMEM_LIMIT_BYTES)
    cparams_parallel = pltpu.CompilerParams(
        dimension_semantics=("parallel",),           # independent row blocks -> shard over v7x's 2 TCs
        vmem_limit_bytes=_VMEM_LIMIT_BYTES)

    # ---- pass 1: spectral projection (reduction over nodes) + coefficient fusion -> x_dspec [K, C] ----
    x_dspec = pl.pallas_call(
        _spectral_project_kernel,
        out_shape=jax.ShapeDtypeStruct((K, C), jnp.float32),
        grid_spec=pltpu.PrefetchScalarGridSpec(
            num_scalar_prefetch=0, grid=grid,
            in_specs=[pl.BlockSpec((K, C), lambda i: (0, 0)),     # coefs (resident)
                      pl.BlockSpec((TN, 1), lambda i: (i, 0)),    # mass row tile
                      pl.BlockSpec((TN, C), lambda i: (i, 0)),    # x row tile
                      pl.BlockSpec((TN, K), lambda i: (i, 0))],   # evecs row tile
            out_specs=pl.BlockSpec((K, C), lambda i: (0, 0)),
            scratch_shapes=[pltpu.VMEM((K, C), jnp.float32)]),
        compiler_params=cparams_reduce,
        cost_estimate=pl.CostEstimate(
            flops=int(2 * N * K * C + N * C),
            transcendentals=0,
            bytes_accessed=int(4 * (N * K + N * C + N + 2 * K * C))),
    )(coefs, mass2, x_in, evecs)

    # ---- pass 2: expansion + (concat-free) MiniMLP + residual, per row block ----
    operands = [x_in, evecs, x_dspec]
    in_specs = [pl.BlockSpec((TN, C), lambda i: (i, 0)),
                pl.BlockSpec((TN, K), lambda i: (i, 0)),
                pl.BlockSpec((K, C), lambda i: (0, 0))]
    flops = 2 * N * K * C + 2 * N * C
    param_bytes = 0
    if mlp_weights:
        w0 = jnp.asarray(mlp_weights[0])
        params = [w0[:C, :], w0[C:, :], jnp.reshape(mlp_biases[0], (1, -1))]   # tiny weight split
        flops += 2 * N * (2 * C) * int(w0.shape[1])
        for w, b in zip(mlp_weights[1:], mlp_biases[1:]):
            params += [jnp.asarray(w), jnp.reshape(b, (1, -1))]
            flops += 2 * N * int(w.shape[0]) * int(w.shape[1]) + N * int(w.shape[0])
        operands += params
        in_specs += [pl.BlockSpec(p.shape, lambda i: (0, 0)) for p in params]
        param_bytes = sum(int(p.size) * p.dtype.itemsize for p in params)

    out = pl.pallas_call(
        _expand_mlp_kernel,
        out_shape=jax.ShapeDtypeStruct((N, C), x_in.dtype),
        grid_spec=pltpu.PrefetchScalarGridSpec(
            num_scalar_prefetch=0, grid=grid,
            in_specs=in_specs,
            out_specs=pl.BlockSpec((TN, C), lambda i: (i, 0))),
        compiler_params=cparams_parallel,
        cost_estimate=pl.CostEstimate(
            flops=int(flops), transcendentals=0,
            bytes_accessed=int(4 * (2 * N * C + N * K + K * C) + param_bytes)),
    )(*operands)
    return out


# --------------------------------------------------------------------------------------
# Pure-JAX reference (follows the PyTorch forward literally, eval mode, f32)
# --------------------------------------------------------------------------------------
def _reference(x_in, mass, evals_list, evecs, diffusion_time, mlp_weights, mlp_biases, single_t):
    N, C = x_in.shape
    P = len(evals_list)
    x_spec = evecs.T @ (mass[:, None] * x_in)                       # to_basis
    if single_t:
        v = jnp.exp(-diffusion_time[0] * evals_list[0])
        for p in range(1, P):
            v = jnp.kron(v, jnp.exp(-diffusion_time[p] * evals_list[p]))
        coefs = jnp.tile(v[None, :], (C, 1)).T
    else:
        cols = []
        for c in range(C):
            v = jnp.exp(-diffusion_time[0, c] * evals_list[0])
            for p in range(1, P):
                v = jnp.kron(v, jnp.exp(-diffusion_time[p, c] * evals_list[p]))
            cols.append(v)
        coefs = jnp.stack(cols, axis=1)
    x_diffuse = evecs @ (coefs * x_spec)                            # from_basis
    if not mlp_weights:
        return x_diffuse + x_in
    h = jnp.concatenate([x_in, x_diffuse], axis=-1)
    n_layers = len(mlp_weights)
    for i, (w, b) in enumerate(zip(mlp_weights, mlp_biases)):
        h = h @ w + b[None, :]
        if i + 1 < n_layers:
            h = jnp.maximum(h, 0.0)
    return h + x_in


# --------------------------------------------------------------------------------------
# Demo / correctness check
# --------------------------------------------------------------------------------------
if __name__ == "__main__":
    key = jax.random.PRNGKey(0)
    ks = jax.random.split(key, 8)

    # Product of P=2 factor graphs: N = 32*32 nodes, K = 8*8 eigenpairs.
    P = 2
    N = 32 * 32
    k_per = [8, 8]
    K = k_per[0] * k_per[1]
    C = 128                    # C_width = 128 -> lane-dense stores + full MXU columns (perf feedback)
    mlp_hidden_dims = [128]
    single_t = False

    x_in = jax.random.normal(ks[0], (N, C), dtype=jnp.float32)
    evecs = jax.random.normal(ks[1], (N, K), dtype=jnp.float32) / jnp.sqrt(N)
    evals_list = [jax.random.uniform(ks[2], (k_per[0],), jnp.float32, 0.0, 2.0),
                  jax.random.uniform(ks[3], (k_per[1],), jnp.float32, 0.0, 2.0)]
    mass = jax.random.uniform(ks[4], (N,), jnp.float32, 0.5, 1.5)
    # diffusion_time: nn.init.uniform -> U(0, 1), shape [P, C_inout] for single_t=False
    diffusion_time = jax.random.uniform(ks[5], (P, C), jnp.float32)

    # MiniMLP([2*C] + hidden + [C]) weights in applied layout (h @ W + b), torch-Linear-like init.
    sizes = [2 * C] + mlp_hidden_dims + [C]
    weights, biases = [], []
    wkeys = jax.random.split(ks[6], len(sizes) - 1)
    for i in range(len(sizes) - 1):
        bound = float(sizes[i]) ** -0.5
        kw, kb = jax.random.split(wkeys[i])
        weights.append(jax.random.uniform(kw, (sizes[i], sizes[i + 1]), jnp.float32, -bound, bound))
        biases.append(jax.random.uniform(kb, (sizes[i + 1],), jnp.float32, -bound, bound))

    # row_tile=256 forces a 4-step grid so the multi-block reduction / pipelined path is exercised
    # even at this toy size (the auto-picker would choose a single block for N=1024).
    out = cpgnn_block_v2_forward(x_in, mass, evals_list, evecs, diffusion_time,
                                 weights, biases, single_t=single_t, row_tile=256)
    out = jax.block_until_ready(out)

    ref = _reference(x_in, mass, evals_list, evecs, diffusion_time, weights, biases, single_t)
    assert out.shape == (N, C)
    max_err = float(jnp.max(jnp.abs(out - ref)))
    # bf16 MXU operands with f32 accumulation -> tolerance accounts for bf16 rounding.
    assert jnp.allclose(out, ref, atol=3e-2, rtol=3e-2), f"mismatch vs reference, max abs err {max_err}"

    print("KERNEL_OK")
</pallas_src>

<mosaic_0001>
module attributes {stable_mosaic.version = 11 : i64} {
  func.func @_spectral_project_kernel(%arg0: i32, %arg1: memref<64x128xf32, #tpu.memory_space<vmem>>, %arg2: memref<256x1xf32, #tpu.memory_space<vmem>>, %arg3: memref<256x128xf32, #tpu.memory_space<vmem>>, %arg4: memref<256x64xf32, #tpu.memory_space<vmem>>, %arg5: memref<64x128xf32, #tpu.memory_space<vmem>>, %arg6: memref<64x128xf32, #tpu.memory_space<vmem>>) attributes {dimension_semantics = [#tpu.dimension_semantics<arbitrary>], iteration_bounds = array<i64: 4>, scalar_prefetch = 0 : i64, scratch_operands = 1 : i64, tpu.core_type = #tpu.core_type<tc>, window_params = [{pipeline_mode = #tpu.pipeline_mode<synchronous>, transform_indices = @transform_0, window_bounds = array<i64: 64, 128>}, {transform_indices = @transform_1, window_bounds = array<i64: 256, 1>}, {transform_indices = @transform_2, window_bounds = array<i64: 256, 128>}, {transform_indices = @transform_3, window_bounds = array<i64: 256, 64>}, {pipeline_mode = #tpu.pipeline_mode<synchronous>, transform_indices = @transform_4, window_bounds = array<i64: 64, 128>}]} {
    %c0_i32 = arith.constant 0 : i32
    %0 = arith.cmpi eq, %arg0, %c0_i32 : i32
    %1 = arith.extui %0 : i1 to i32
    %c0_i32_0 = arith.constant 0 : i32
    %2 = arith.cmpi ne, %1, %c0_i32_0 : i32
    scf.if %2 {
      %cst_11 = arith.constant 0.000000e+00 : f32
      %17 = vector.broadcast %cst_11 : f32 to vector<64x128xf32>
      %c0_12 = arith.constant 0 : index
      %c0_13 = arith.constant 0 : index
      %18 = vector.load %arg6[%c0_12, %c0_13] : memref<64x128xf32, #tpu.memory_space<vmem>>, vector<64x128xf32>
      tpu.vector_store %arg6[%c0_12, %c0_13], %17 {strides = array<i32>} : memref<64x128xf32, #tpu.memory_space<vmem>>, vector<64x128xf32>,
    } else {
    }
    %c0 = arith.constant 0 : index
    %c0_1 = arith.constant 0 : index
    %3 = vector.load %arg3[%c0, %c0_1] : memref<256x128xf32, #tpu.memory_space<vmem>>, vector<256x128xf32>
    %c0_2 = arith.constant 0 : index
    %c0_3 = arith.constant 0 : index
    %4 = vector.load %arg2[%c0_2, %c0_3] : memref<256x1xf32, #tpu.memory_space<vmem>>, vector<256x1xf32>
    %5 = vector.broadcast %4 : vector<256x1xf32> to vector<256x128xf32>
    %6 = arith.mulf %3, %5 : vector<256x128xf32>
    %c0_4 = arith.constant 0 : index
    %c0_5 = arith.constant 0 : index
    %7 = vector.load %arg6[%c0_4, %c0_5] : memref<64x128xf32, #tpu.memory_space<vmem>>, vector<64x128xf32>
    %c0_6 = arith.constant 0 : index
    %c0_7 = arith.constant 0 : index
    %8 = vector.load %arg4[%c0_6, %c0_7] : memref<256x64xf32, #tpu.memory_space<vmem>>, vector<256x64xf32>
    %9 = arith.truncf %8 : vector<256x64xf32> to vector<256x64xbf16>
    %10 = arith.truncf %6 : vector<256x128xf32> to vector<256x128xbf16>
    %cst = arith.constant dense<0.000000e+00> : vector<64x128xf32>
    %11 = tpu.matmul %9, %10, %cst {dimension_numbers = #tpu.dot_dimension_numbers<[0], [0], [1], [1], [0, 1, 1, 1], [], []>} : vector<256x64xbf16>, vector<256x128xbf16>, vector<64x128xf32> -> vector<64x128xf32>
    %12 = arith.addf %7, %11 : vector<64x128xf32>
    %c0_8 = arith.constant 0 : index
    %c0_9 = arith.constant 0 : index
    %13 = vector.load %arg6[%c0_8, %c0_9] : memref<64x128xf32, #tpu.memory_space<vmem>>, vector<64x128xf32>
    tpu.vector_store %arg6[%c0_8, %c0_9], %12 {strides = array<i32>} : memref<64x128xf32, #tpu.memory_space<vmem>>, vector<64x128xf32>,
    %c3_i32 = arith.constant 3 : i32
    %14 = arith.cmpi eq, %arg0, %c3_i32 : i32
    %15 = arith.extui %14 : i1 to i32
    %c0_i32_10 = arith.constant 0 : i32
    %16 = arith.cmpi ne, %15, %c0_i32_10 : i32
    scf.if %16 {
      %c0_11 = arith.constant 0 : index
      %c0_12 = arith.constant 0 : index
      %17 = vector.load %arg1[%c0_11, %c0_12] : memref<64x128xf32, #tpu.memory_space<vmem>>, vector<64x128xf32>
      %c0_13 = arith.constant 0 : index
      %c0_14 = arith.constant 0 : index
      %18 = vector.load %arg6[%c0_13, %c0_14] : memref<64x128xf32, #tpu.memory_space<vmem>>, vector<64x128xf32>
      %19 = arith.mulf %17, %18 : vector<64x128xf32>
      %c0_15 = arith.constant 0 : index
      %c0_16 = arith.constant 0 : index
      %20 = vector.load %arg5[%c0_15, %c0_16] : memref<64x128xf32, #tpu.memory_space<vmem>>, vector<64x128xf32>
      tpu.vector_store %arg5[%c0_15, %c0_16], %19 {strides = array<i32>} : memref<64x128xf32, #tpu.memory_space<vmem>>, vector<64x128xf32>,
    } else {
    }
    return
  }
  func.func @transform_0(%arg0: i32) -> (i32, i32) {
    %c0_i32 = arith.constant 0 : i32
    %c0_i32_0 = arith.constant 0 : i32
    %c0_i32_1 = arith.constant 0 : i32
    return %c0_i32, %c0_i32_0 : i32, i32
  }
  func.func @transform_1(%arg0: i32) -> (i32, i32) {
    %c0_i32 = arith.constant 0 : i32
    %c0_i32_0 = arith.constant 0 : i32
    return %arg0, %c0_i32 : i32, i32
  }
  func.func @transform_2(%arg0: i32) -> (i32, i32) {
    %c0_i32 = arith.constant 0 : i32
    %c0_i32_0 = arith.constant 0 : i32
    return %arg0, %c0_i32 : i32, i32
  }
  func.func @transform_3(%arg0: i32) -> (i32, i32) {
    %c0_i32 = arith.constant 0 : i32
    %c0_i32_0 = arith.constant 0 : i32
    return %arg0, %c0_i32 : i32, i32
  }
  func.func @transform_4(%arg0: i32) -> (i32, i32) {
    %c0_i32 = arith.constant 0 : i32
    %c0_i32_0 = arith.constant 0 : i32
    %c0_i32_1 = arith.constant 0 : i32
    return %c0_i32, %c0_i32_0 : i32, i32
  }
}

</mosaic_0001>

<bundles_post_ra>
// kernel: tpu_custom_call.1
= control target key start
LH: loop header
LB: loop body
LE: loop exit
PB: predicated region body
PF: predicated region fallthrough
CT: control target
= control target key end

     0   :  { %9 = vsyncpa [#allocation4], 0  ;;  %s951_s15 = smov 0   ;;  %s1114_s0 = inlined_call_operand.vmem [shape: f32[64,128], index: 0, kind: input, shape index: {}]   ;;  %s1115_s1 = inlined_call_operand.vmem [shape: f32[1024,1], index: 1, kind: input, shape index: {}]   ;;  %s1116_s2 = inlined_call_operand.vmem [shape: f32[1024,128], index: 2, kind: input, shape index: {}]   ;;  %s1117_s3 = inlined_call_operand.vmem [shape: f32[1024,64], index: 3, kind: input, shape index: {}]   ;;  %s1118_s4 = inlined_call_operand.hbm [shape: f32[64,128], index: 4, kind: output, shape index: {}]  }
   0x1 LB: > { %s957_s16 = sadd.s32 4294967295, %s919_s15   ;;  %p795_p0 = scmp.ge.s32.totalorder %s919_s15, 1  ;;  %s919_s15 = sphi %s951_s15, %s15_s15  }
   0x2   : > { %p181_p1 = scmp.lt.s32.totalorder %s919_s15, 5 }
   0x4   : > { %p182_p2 = pnand %p795_p0, %p181_p1 }
   0x5   : > { %s796_s17 = sshll.u32 (!%p182_p2), %s957_s16, 5  ;;  %p802_p4 = scmp.ne.s32.totalorder (!%p182_p2), %s957_s16, 0 }
   0x6   : > { %185 = sbr.rel (%p182_p2) target bundleno = 463 (0x1cf), region = 36  ;;  %p213_p3 = scmp.lt.s32.totalorder (!%p182_p2), %s796_s17, 127 }
   0xb   : > { %s1120_s17 = smov (!%p213_p3, %s796_s17), 127  ;;  %234 = sbr.rel (%p802_p4) target bundleno = 21 (0x15), region = 40 }
   0xc   : > { %s797_s18 = sshll.u32 %s1120_s17, 3 }
   0xd   : > { %s965_s21 = scalar_lea.vmem %s1115_s1, %s797_s18  ;;  %s970_s24 = scalar_lea.vmem %s1116_s2, %s797_s18 }
   0xe   : > { %s975_s27 = scalar_lea.vmem %s1117_s3, %s797_s18 }
  0x10   : > { %v921_v0 = vmov 0.0  }
  0x11   : > { %235 = vst [vmem:[#allocation2 + $0x30] sm:$0xff] %v921_v0  ;;  %236 = vst [vmem:[#allocation2] sm:$0xff] %v921_v0 }
  0x12   : > { %237 = vst [vmem:[#allocation2 + $0x18] sm:$0xff] %v921_v0  ;;  %238 = vst [vmem:[#allocation2 + $0x10] sm:$0xff] %v921_v0 }
  0x13   : > { %239 = vst [vmem:[#allocation2 + $0x8] sm:$0xff] %v921_v0  ;;  %240 = vst [vmem:[#allocation2 + $0x20] sm:$0xff] %v921_v0 }
  0x14   : > { %241 = vst [vmem:[#allocation2 + $0x28] sm:$0xff] %v921_v0  ;;  %242 = vst [vmem:[#allocation2 + $0x38] sm:$0xff] %v921_v0 }
  0x15 PF: > { %v305_v1 = vld [vmem:[%s965_s21 + $0xf0] sm:$0xff]  ;;  %v922_v3 = vmov 0   ;;  %v306_v4 = vld [vmem:[%s965_s21 + $0xf8] sm:$0xff]  ;;  %v303_v6 = vld [vmem:[%s965_s21 + $0xe0] sm:$0xff]  ;;  %p803_p5 = scmp.ne.s32.totalorder %s957_s16, 3 }
  0x16   : > { %v289_v2 = vld [vmem:[%s965_s21 + $0x70] sm:$0xff]  ;;  %884 = vset.pattern.permute.xlu1 %v922_v3  ;;  %883 = vset.pattern.permute.xlu0 %v922_v3  ;;  %v290_v5 = vld [vmem:[%s965_s21 + $0x78] sm:$0xff]  ;;  %v304_v7 = vld [vmem:[%s965_s21 + $0xe8] sm:$0xff] }
  0x17   : > { %459 = vperm.xlu0 %883, %v305_v1   ;;  %379 = vperm.xlu1 %884, %v289_v2   ;;  %v288_v8 = vld [vmem:[%s965_s21 + $0x68] sm:$0xff]  ;;  %v287_v9 = vld [vmem:[%s965_s21 + $0x60] sm:$0xff]  ;;  %v302_v10 = vld [vmem:[%s965_s21 + $0xd8] sm:$0xff] }
  0x18   : > { %v301_v11 = vld [vmem:[%s965_s21 + $0xd0] sm:$0xff]  ;;  %v286_v12 = vld [vmem:[%s965_s21 + $0x58] sm:$0xff]  ;;  %v300_v14 = vld [vmem:[%s965_s21 + $0xc8] sm:$0xff] }
  0x19   : > { %v285_v13 = vld [vmem:[%s965_s21 + $0x50] sm:$0xff]  ;;  %v299_v15 = vld [vmem:[%s965_s21 + $0xc0] sm:$0xff]  ;;  %v284_v16 = vld [vmem:[%s965_s21 + $0x48] sm:$0xff] }
  0x1a   : > { %v283_v17 = vld [vmem:[%s965_s21 + $0x40] sm:$0xff]  ;;  %v298_v18 = vld [vmem:[%s965_s21 + $0xb8] sm:$0xff]  ;;  %v297_v19 = vld [vmem:[%s965_s21 + $0xb0] sm:$0xff] }
  0x1b   : > { %464 = vperm.xlu0 %883, %v306_v4   ;;  %384 = vperm.xlu1 %884, %v290_v5   ;;  %v282_v20 = vld [vmem:[%s965_s21 + $0x38] sm:$0xff]  ;;  %v281_v21 = vld [vmem:[%s965_s21 + $0x30] sm:$0xff]  ;;  %v296_v22 = vld [vmem:[%s965_s21 + $0xa8] sm:$0xff] }
  0x1c   : > { %v295_v23 = vld [vmem:[%s965_s21 + $0xa0] sm:$0xff]  ;;  %v280_v24 = vld [vmem:[%s965_s21 + $0x28] sm:$0xff]  ;;  %v294_v26 = vld [vmem:[%s965_s21 + $0x98] sm:$0xff] }
  0x1d   : > { %v279_v25 = vld [vmem:[%s965_s21 + $0x20] sm:$0xff]  ;;  %v293_v27 = vld [vmem:[%s965_s21 + $0x90] sm:$0xff]  ;;  %v278_v28 = vld [vmem:[%s965_s21 + $0x18] sm:$0xff] }
  0x1e   : > { %v277_v29 = vld [vmem:[%s965_s21 + $0x10] sm:$0xff]  ;;  %v292_v30 = vld [vmem:[%s965_s21 + $0x88] sm:$0xff]  ;;  %v291_v31 = vld [vmem:[%s965_s21 + $0x80] sm:$0xff] }
  0x1f   : > { %449 = vperm.xlu0 %883, %v303_v6   ;;  %454 = vperm.xlu1 %884, %v304_v7   ;;  %v276_v32 = vld [vmem:[%s965_s21 + $0x8] sm:$0xff]  ;;  %v275_v33 = vld [vmem:[%s965_s21] sm:$0xff]  ;;  %v525_v37 = vld [vmem:[%s975_s27 + $0x90] sm:$0xff] }
  0x20   : > { %v523_v34 = vld [vmem:[%s975_s27 + $0x80] sm:$0xff]  ;;  %v524_v35 = vld [vmem:[%s975_s27 + $0x88] sm:$0xff]  ;;  %v526_v38 = vld [vmem:[%s975_s27 + $0x98] sm:$0xff] }
  0x21   : > { %v547_v36 = vpack.c.bf16 %v524_v35, %v523_v34  ;;  %v507_v39 = vld [vmem:[%s975_s27] sm:$0xff]  ;;  %v508_v40 = vld [vmem:[%s975_s27 + $0x8] sm:$0xff]  ;;  %v548_v41 = vpack.c.bf16 %v526_v38, %v525_v37  ;;  %v509_v45 = vld [vmem:[%s975_s27 + $0x10] sm:$0xff] }
  0x22   : > { %v539_v42 = vpack.c.bf16 %v508_v40, %v507_v39  ;;  %v527_v43 = vld [vmem:[%s975_s27 + $0xa0] sm:$0xff]  ;;  %v528_v44 = vld [vmem:[%s975_s27 + $0xa8] sm:$0xff]  ;;  %v510_v46 = vld [vmem:[%s975_s27 + $0x18] sm:$0xff] }
  0x23   : > { %374 = vperm.xlu1 %884, %v288_v8   ;;  %369 = vperm.xlu0 %883, %v287_v9   ;;  %v549_v47 = vpack.c.bf16 %v528_v44, %v527_v43  ;;  %v540_v48 = vpack.c.bf16 %v510_v46, %v509_v45  ;;  %v529_v49 = vld [vmem:[%s975_s27 + $0xb0] sm:$0xff]  ;;  %v530_v50 = vld [vmem:[%s975_s27 + $0xb8] sm:$0xff]  ;;  %v511_v51 = vld [vmem:[%s975_s27 + $0x20] sm:$0xff] }
  0x24   : > { %v512_v52 = vld [vmem:[%s975_s27 + $0x28] sm:$0xff]  ;;  %v550_v53 = vpack.c.bf16 %v530_v50, %v529_v49  ;;  %v531_v55 = vld [vmem:[%s975_s27 + $0xc0] sm:$0xff]  ;;  %v513_v57 = vld [vmem:[%s975_s27 + $0x30] sm:$0xff] }
  0x25   : > { %v541_v54 = vpack.c.bf16 %v512_v52, %v511_v51  ;;  %v532_v56 = vld [vmem:[%s975_s27 + $0xc8] sm:$0xff]  ;;  %v514_v58 = vld [vmem:[%s975_s27 + $0x38] sm:$0xff]  ;;  %v533_v61 = vld [vmem:[%s975_s27 + $0xd0] sm:$0xff] }
  0x26   : > { %v551_v59 = vpack.c.bf16 %v532_v56, %v531_v55  ;;  %v542_v60 = vpack.c.bf16 %v514_v58, %v513_v57  ;;  %v534_v62 = vld [vmem:[%s975_s27 + $0xd8] sm:$0xff]  ;;  %v515_v63 = vld [vmem:[%s975_s27 + $0x40] sm:$0xff]  ;;  %v516_v0 = vld [vmem:[%s975_s27 + $0x48] sm:$0xff] }
  0x27   : > { %444 = vperm.xlu1 %884, %v302_v10   ;;  %439 = vperm.xlu0 %883, %v301_v11   ;;  %v552_v1 = vpack.c.bf16 %v534_v62, %v533_v61  ;;  %v543_v2 = vpack.c.bf16 %v516_v0, %v515_v63  ;;  %v535_v3 = vld [vmem:[%s975_s27 + $0xe0] sm:$0xff]  ;;  %v536_v4 = vld [vmem:[%s975_s27 + $0xe8] sm:$0xff]  ;;  %v517_v5 = vld [vmem:[%s975_s27 + $0x50] sm:$0xff] }
  0x28   : > { %v518_v6 = vld [vmem:[%s975_s27 + $0x58] sm:$0xff]  ;;  %v553_v7 = vpack.c.bf16 %v536_v4, %v535_v3  ;;  %v537_v9 = vld [vmem:[%s975_s27 + $0xf0] sm:$0xff]  ;;  %v519_v11 = vld [vmem:[%s975_s27 + $0x60] sm:$0xff] }
  0x29   : > { %v544_v8 = vpack.c.bf16 %v518_v6, %v517_v5  ;;  %v538_v10 = vld [vmem:[%s975_s27 + $0xf8] sm:$0xff]  ;;  %v256_v38 = vld [vmem:[%s970_s24 + $0x68] sm:$0xff]  ;;  %v255_v39 = vld [vmem:[%s970_s24 + $0x60] sm:$0xff] }
  0x2a   : > { %v270_v45 = vld [vmem:[%s970_s24 + $0xd8] sm:$0xff]  ;;  %v269_v46 = vld [vmem:[%s970_s24 + $0xd0] sm:$0xff]  ;;  %v251_v3 = vld [vmem:[%s970_s24 + $0x40] sm:$0xff] }
  0x2b   : > { %364 = vperm.xlu1 %884, %v286_v12   ;;  %359 = vperm.xlu0 %883, %v285_v13   ;;  %v520_v12 = vld [vmem:[%s975_s27 + $0x68] sm:$0xff]  ;;  %v554_v13 = vpack.c.bf16 %v538_v10, %v537_v9  ;;  %v254_v52 = vld [vmem:[%s970_s24 + $0x58] sm:$0xff]  ;;  %v265_v10 = vld [vmem:[%s970_s24 + $0xb0] sm:$0xff] }
  0x2c   : > { %v266_v9 = vld [vmem:[%s970_s24 + $0xb8] sm:$0xff] }
  0x2f   : > { %434 = vperm.xlu1 %884, %v300_v14   ;;  %429 = vperm.xlu0 %883, %v299_v15   ;;  %v545_v14 = vpack.c.bf16 %v520_v12, %v519_v11  ;;  %v521_v15 = vld [vmem:[%s975_s27 + $0x70] sm:$0xff] }
  0x33   : > { %354 = vperm.xlu1 %884, %v284_v16   ;;  %349 = vperm.xlu0 %883, %v283_v17   ;;  %v522_v16 = vld [vmem:[%s975_s27 + $0x78] sm:$0xff] }
  0x34   : > { %v546_v17 = vpack.c.bf16 %v522_v16, %v521_v15  ;;  %v250_v16 = vld [vmem:[%s970_s24 + $0x38] sm:$0xff] }
  0x37   : > { %424 = vperm.xlu1 %884, %v298_v18   ;;  %419 = vperm.xlu0 %883, %v297_v19   ;;  %v273_v19 = vld [vmem:[%s970_s24 + $0xf0] sm:$0xff] }
  0x3b   : > { %344 = vperm.xlu1 %884, %v282_v20   ;;  %339 = vperm.xlu0 %883, %v281_v21   ;;  %v257_v21 = vld [vmem:[%s970_s24 + $0x70] sm:$0xff] }
  0x3f   : > { %414 = vperm.xlu1 %884, %v296_v22   ;;  %409 = vperm.xlu0 %883, %v295_v23   ;;  %v274_v22 = vld [vmem:[%s970_s24 + $0xf8] sm:$0xff] }
  0x40   : > { %v258_v23 = vld [vmem:[%s970_s24 + $0x78] sm:$0xff] }
  0x43   : > { %334 = vperm.xlu1 %884, %v280_v24   ;;  %329 = vperm.xlu0 %883, %v279_v25  }
  0x47   : > { %404 = vperm.xlu1 %884, %v294_v26   ;;  %399 = vperm.xlu0 %883, %v293_v27  }
  0x4b   : > { %324 = vperm.xlu1 %884, %v278_v28   ;;  %319 = vperm.xlu0 %883, %v277_v29  }
  0x4f   : > { %394 = vperm.xlu1 %884, %v292_v30   ;;  %389 = vperm.xlu0 %883, %v291_v31   ;;  %v271_v30 = vld [vmem:[%s970_s24 + $0xe0] sm:$0xff]  ;;  %v272_v31 = vld [vmem:[%s970_s24 + $0xe8] sm:$0xff] }
  0x53   : > { %314 = vperm.xlu1 %884, %v276_v32   ;;  %309 = vperm.xlu0 %883, %v275_v33  }
  0x71   : > { %587 = vxpose.xlu0.c.b16.start [1/8] (narrow) %v547_v36, 64 }
  0x75   : > { %588 = vxpose.xlu0.c.b16.cont [2/8] (narrow) %v548_v41, 64 }
  0x76   : > { %571 = vxpose.xlu1.c.b16.start [1/8] (narrow) %v539_v42, 64 }
  0x79   : > { %589 = vxpose.xlu0.c.b16.cont [3/8] (narrow) %v549_v47, 64 }
  0x7a   : > { %572 = vxpose.xlu1.c.b16.cont [2/8] (narrow) %v540_v48, 64 }
  0x7d   : > { %590 = vxpose.xlu0.c.b16.cont [4/8] (narrow) %v550_v53, 64  ;;  %v253_v53 = vld [vmem:[%s970_s24 + $0x50] sm:$0xff] }
  0x7e   : > { %573 = vxpose.xlu1.c.b16.cont [3/8] (narrow) %v541_v54, 64 }
  0x81   : > { %591 = vxpose.xlu0.c.b16.cont [5/8] (narrow) %v551_v59, 64  ;;  %v268_v59 = vld [vmem:[%s970_s24 + $0xc8] sm:$0xff] }
  0x82   : > { %574 = vxpose.xlu1.c.b16.cont [4/8] (narrow) %v542_v60, 64  ;;  %v267_v60 = vld [vmem:[%s970_s24 + $0xc0] sm:$0xff] }
  0x85   : > { %592 = vxpose.xlu0.c.b16.cont [6/8] (narrow) %v552_v1, 64 }
  0x86   : > { %575 = vxpose.xlu1.c.b16.cont [5/8] (narrow) %v543_v2, 64  ;;  %v252_v2 = vld [vmem:[%s970_s24 + $0x48] sm:$0xff] }
  0x89   : > { %593 = vxpose.xlu0.c.b16.cont [7/8] (narrow) %v553_v7, 64 }
  0x8a   : > { %576 = vxpose.xlu1.c.b16.cont [6/8] (narrow) %v544_v8, 64 }
  0x8d   : > { %594 = vxpose.xlu0.c.b16.end [8/8] (narrow) %v554_v13, 64 }
  0x8e   : > { %577 = vxpose.xlu1.c.b16.cont [7/8] (narrow) %v545_v14, 64 }
  0x92   : > { %v460_v18 = vpop.permute.xlu0 %459  ;;  %v380_v20 = vpop.permute.xlu1 %379  ;;  %578 = vxpose.xlu1.c.b16.end [8/8] (narrow) %v546_v17, 64  ;;  %v249_v17 = vld [vmem:[%s970_s24 + $0x30] sm:$0xff] }
  0x93   : > { %v497_v24 = vmul.f32 %v460_v18, %v273_v19  ;;  %v481_v27 = vmul.f32 %v380_v20, %v257_v21 }
  0x96   : > { %v465_v25 = vpop.permute.xlu0 %464  ;;  %v385_v26 = vpop.permute.xlu1 %384 }
  0x97   : > { %v498_v28 = vmul.f32 %v465_v25, %v274_v22  ;;  %v482_v29 = vmul.f32 %v385_v26, %v258_v23  ;;  %v264_v23 = vld [vmem:[%s970_s24 + $0xa8] sm:$0xff] }
  0x99   : > { %v570_v32 = vpack.c.bf16 %v498_v28, %v497_v24  ;;  %v562_v33 = vpack.c.bf16 %v482_v29, %v481_v27  ;;  %v263_v24 = vld [vmem:[%s970_s24 + $0xa0] sm:$0xff] }
  0x9a   : > { %v450_v34 = vpop.permute.xlu0 %449  ;;  %v455_v35 = vpop.permute.xlu1 %454 }
  0x9b   : > { %v495_v36 = vmul.f32 %v450_v34, %v271_v30  ;;  %v496_v37 = vmul.f32 %v455_v35, %v272_v31  ;;  %808 = vmatprep.subr.bf16.mxu0 %v570_v32  ;;  %848 = vmatprep.subr.bf16.mxu1 %v570_v32  ;;  %v248_v30 = vld [vmem:[%s970_s24 + $0x28] sm:$0xff]  ;;  %v247_v31 = vld [vmem:[%s970_s24 + $0x20] sm:$0xff] }
  0x9c   : > { %809 = vmatpush3.bf16.msra.mxu0 %v562_v33  ;;  %856 = vmatpush3.bf16.msra.mxu1 %v562_v33 }
  0x9d   : > { %v569_v40 = vpack.c.bf16 %v496_v37, %v495_v36  ;;  %v262_v37 = vld [vmem:[%s970_s24 + $0x98] sm:$0xff] }
  0x9e   : > { %v375_v41 = vpop.permute.xlu1 %374  ;;  %v370_v42 = vpop.permute.xlu0 %369 }
  0x9f   : > { %v480_v43 = vmul.f32 %v375_v41, %v256_v38  ;;  %v479_v44 = vmul.f32 %v370_v42, %v255_v39  ;;  %810 = vmatprep.subr.bf16.mxu0 %v569_v40  ;;  %849 = vmatprep.subr.bf16.mxu1 %v569_v40  ;;  %v261_v38 = vld [vmem:[%s970_s24 + $0x90] sm:$0xff] }
  0xa1   : > { %v561_v47 = vpack.c.bf16 %v480_v43, %v479_v44  ;;  %v246_v44 = vld [vmem:[%s970_s24 + $0x18] sm:$0xff] }
  0xa2   : > { %v445_v48 = vpop.permute.xlu1 %444  ;;  %v440_v49 = vpop.permute.xlu0 %439 }
  0xa3   : > { %v494_v50 = vmul.f32 %v445_v48, %v270_v45  ;;  %v493_v51 = vmul.f32 %v440_v49, %v269_v46  ;;  %811 = vmatpush3.bf16.msra.mxu0 %v561_v47  ;;  %857 = vmatpush3.bf16.msra.mxu1 %v561_v47  ;;  %v245_v45 = vld [vmem:[%s970_s24 + $0x10] sm:$0xff] }
  0xa5   : > { %v568_v54 = vpack.c.bf16 %v494_v50, %v493_v51  ;;  %v260_v51 = vld [vmem:[%s970_s24 + $0x88] sm:$0xff] }
  0xa6   : > { %v365_v55 = vpop.permute.xlu1 %364  ;;  %v360_v56 = vpop.permute.xlu0 %359 }
  0xa7   : > { %v478_v57 = vmul.f32 %v365_v55, %v254_v52  ;;  %v477_v58 = vmul.f32 %v360_v56, %v253_v53  ;;  %812 = vmatprep.subr.bf16.mxu0 %v568_v54  ;;  %850 = vmatprep.subr.bf16.mxu1 %v568_v54  ;;  %v259_v52 = vld [vmem:[%s970_s24 + $0x80] sm:$0xff] }
  0xa9   : > { %v560_v61 = vpack.c.bf16 %v478_v57, %v477_v58  ;;  %v244_v58 = vld [vmem:[%s970_s24 + $0x8] sm:$0xff] }
  0xaa   : > { %v435_v62 = vpop.permute.xlu1 %434  ;;  %v430_v63 = vpop.permute.xlu0 %429 }
  0xab   : > { %v492_v0 = vmul.f32 %v435_v62, %v268_v59  ;;  %v491_v1 = vmul.f32 %v430_v63, %v267_v60  ;;  %813 = vmatpush3.bf16.msra.mxu0 %v560_v61  ;;  %858 = vmatpush3.bf16.msra.mxu1 %v560_v61  ;;  %v243_v59 = vld [vmem:[%s970_s24] sm:$0xff] }
  0xad   : > { %v567_v4 = vpack.c.bf16 %v492_v0, %v491_v1 }
  0xae   : > { %v355_v5 = vpop.permute.xlu1 %354  ;;  %v350_v6 = vpop.permute.xlu0 %349 }
  0xaf   : > { %v476_v7 = vmul.f32 %v355_v5, %v252_v2  ;;  %v475_v8 = vmul.f32 %v350_v6, %v251_v3  ;;  %814 = vmatprep.subr.bf16.mxu0 %v567_v4  ;;  %851 = vmatprep.subr.bf16.mxu1 %v567_v4 }
  0xb1   : > { %v559_v11 = vpack.c.bf16 %v476_v7, %v475_v8 }
  0xb2   : > { %v425_v12 = vpop.permute.xlu1 %424  ;;  %v420_v13 = vpop.permute.xlu0 %419 }
  0xb3   : > { %v490_v14 = vmul.f32 %v425_v12, %v266_v9  ;;  %v489_v15 = vmul.f32 %v420_v13, %v265_v10  ;;  %815 = vmatpush3.bf16.msra.mxu0 %v559_v11  ;;  %859 = vmatpush3.bf16.msra.mxu1 %v559_v11  ;;  %v499_v11 = vld [vmem:[#allocation2 + $0x30] sm:$0xff] }
  0xb5   : > { %v566_v18 = vpack.c.bf16 %v490_v14, %v489_v15 }
  0xb6   : > { %v345_v19 = vpop.permute.xlu1 %344  ;;  %v340_v20 = vpop.permute.xlu0 %339 }
  0xb7   : > { %v474_v21 = vmul.f32 %v345_v19, %v250_v16  ;;  %v473_v22 = vmul.f32 %v340_v20, %v249_v17  ;;  %816 = vmatprep.subr.bf16.mxu0 %v566_v18  ;;  %852 = vmatprep.subr.bf16.mxu1 %v566_v18  ;;  %v500_v16 = vld [vmem:[#allocation2] sm:$0xff] }
  0xb9   : > { %v558_v25 = vpack.c.bf16 %v474_v21, %v473_v22  ;;  %v501_v22 = vld [vmem:[#allocation2 + $0x18] sm:$0xff] }
  0xba   : > { %v415_v26 = vpop.permute.xlu1 %414  ;;  %v410_v27 = vpop.permute.xlu0 %409 }
  0xbb   : > { %v488_v28 = vmul.f32 %v415_v26, %v264_v23  ;;  %v487_v29 = vmul.f32 %v410_v27, %v263_v24  ;;  %817 = vmatpush3.bf16.msra.mxu0 %v558_v25  ;;  %860 = vmatpush3.bf16.msra.mxu1 %v558_v25  ;;  %v503_v24 = vld [vmem:[#allocation2 + $0x8] sm:$0xff] }
  0xbd   : > { %v565_v32 = vpack.c.bf16 %v488_v28, %v487_v29 }
  0xbe   : > { %v335_v33 = vpop.permute.xlu1 %334  ;;  %v330_v34 = vpop.permute.xlu0 %329 }
  0xbf   : > { %v472_v35 = vmul.f32 %v335_v33, %v248_v30  ;;  %v471_v36 = vmul.f32 %v330_v34, %v247_v31  ;;  %818 = vmatprep.subr.bf16.mxu0 %v565_v32  ;;  %853 = vmatprep.subr.bf16.mxu1 %v565_v32  ;;  %v502_v32 = vld [vmem:[#allocation2 + $0x10] sm:$0xff]  ;;  %v504_v34 = vld [vmem:[#allocation2 + $0x20] sm:$0xff] }
  0xc1   : > { %v557_v39 = vpack.c.bf16 %v472_v35, %v471_v36 }
  0xc2   : > { %v405_v40 = vpop.permute.xlu1 %404  ;;  %v400_v41 = vpop.permute.xlu0 %399 }
  0xc3   : > { %v486_v42 = vmul.f32 %v405_v40, %v262_v37  ;;  %v485_v43 = vmul.f32 %v400_v41, %v261_v38  ;;  %819 = vmatpush3.bf16.msra.mxu0 %v557_v39  ;;  %861 = vmatpush3.bf16.msra.mxu1 %v557_v39  ;;  %v505_v41 = vld [vmem:[#allocation2 + $0x28] sm:$0xff] }
  0xc5   : > { %v564_v46 = vpack.c.bf16 %v486_v42, %v485_v43 }
  0xc6   : > { %v325_v47 = vpop.permute.xlu1 %324  ;;  %v320_v48 = vpop.permute.xlu0 %319 }
  0xc7   : > { %v470_v49 = vmul.f32 %v325_v47, %v246_v44  ;;  %v469_v50 = vmul.f32 %v320_v48, %v245_v45  ;;  %820 = vmatprep.subr.bf16.mxu0 %v564_v46  ;;  %854 = vmatprep.subr.bf16.mxu1 %v564_v46  ;;  %v506_v46 = vld [vmem:[#allocation2 + $0x38] sm:$0xff] }
  0xc9   : > { %v556_v53 = vpack.c.bf16 %v470_v49, %v469_v50 }
  0xca   : > { %v395_v54 = vpop.permute.xlu1 %394  ;;  %v390_v55 = vpop.permute.xlu0 %389 }
  0xcb   : > { %v484_v56 = vmul.f32 %v395_v54, %v260_v51  ;;  %v483_v57 = vmul.f32 %v390_v55, %v259_v52  ;;  %821 = vmatpush3.bf16.msra.mxu0 %v556_v53  ;;  %862 = vmatpush3.bf16.msra.mxu1 %v556_v53 }
  0xcd   : > { %v563_v60 = vpack.c.bf16 %v484_v56, %v483_v57 }
  0xce   : > { %v315_v61 = vpop.permute.xlu1 %314  ;;  %v310_v62 = vpop.permute.xlu0 %309 }
  0xcf   : > { %v468_v63 = vmul.f32 %v315_v61, %v244_v58  ;;  %v467_v0 = vmul.f32 %v310_v62, %v243_v59  ;;  %822 = vmatprep.subr.bf16.mxu0 %v563_v60  ;;  %855 = vmatprep.subr.bf16.mxu1 %v563_v60 }
  0xd1   : > { %v555_v1 = vpack.c.bf16 %v468_v63, %v467_v0 }
  0xd3   : > { %823 = vmatpush3.bf16.msra.mxu0 %v555_v1  ;;  %863 = vmatpush3.bf16.msra.mxu1 %v555_v1  ;;  %v595_v2 = vpop.trf.xlu0 }
  0xd4   : > { %635 = vmatprep.mubr.bf16.mxu0 %v595_v2 }
  0xd7   : > { %v596_v3 = vpop.trf.xlu0 }
  0xd8   : > { %v579_v4 = vpop.trf.xlu1 }
  0xd9   : > { %636 = vmatmul.mubr.bf16.vlgmr.msra.gmra.mxu0 %v579_v4 }
  0xda   : > { %643 = vmatprep.mubr.bf16.mxu0 %v596_v3 }
  0xdb   : > { %v597_v5 = vpop.trf.xlu0 }
  0xdc   : > { %v580_v6 = vpop.trf.xlu1  ;;  %651 = vmatprep.mubr.bf16.mxu1 %v597_v5 }
  0xdf   : > { %v598_v7 = vpop.trf.xlu0 }
  0xe0   : > { %v581_v8 = vpop.trf.xlu1 }
  0xe1   : > { %644 = vmatmul.mubr.bf16.gmra.mxu0 %v580_v6  ;;  %652 = vmatmul.mubr.bf16.vlgmr.msra.gmra.mxu1 %v581_v8 }
  0xe2   : > { %659 = vmatprep.mubr.bf16.mxu1 %v598_v7 }
  0xe4   : > { %v582_v9 = vpop.trf.xlu1 }
  0xe9   : > { %660 = vmatmul.mubr.bf16.gmra.mxu1 %v582_v9 }
 0x199   : > { %v824_v10 = vpop.f32.mrf.mxu0 }
 0x19b   : > { %v825_v12 = vpop.f32.mrf.mxu0 }
 0x19c   : > { %v826_v13 = vadd.f32 %v825_v12, %v824_v10 }
 0x19d   : > { %v827_v14 = vpop.f32.mrf.mxu0 }
 0x19e   : > { %v668_v15 = vadd.f32 %v826_v13, %v499_v11 }
 0x19f   : > { %v828_v17 = vpop.f32.mrf.mxu0 }
 0x1a0   : > { %676 = vst [vmem:[#allocation2 + $0x30] sm:$0xff] %v668_v15  ;;  %v829_v18 = vadd.f32 %v828_v17, %v827_v14 }
 0x1a1   : > { %v830_v19 = vpop.f32.mrf.mxu0  ;;  %v836_v20 = vpop.f32.mrf.mxu1 }
 0x1a2   : > { %v669_v21 = vadd.f32 %v829_v18, %v500_v16 }
 0x1a3   : > { %v831_v23 = vpop.f32.mrf.mxu0  ;;  %v837_v25 = vpop.f32.mrf.mxu1 }
 0x1a4   : > { %677 = vst [vmem:[#allocation2] sm:$0xff] %v669_v21  ;;  %v832_v26 = vadd.f32 %v831_v23, %v830_v19  ;;  %v838_v27 = vadd.f32 %v837_v25, %v836_v20 }
 0x1a5   : > { %v833_v28 = vpop.f32.mrf.mxu0  ;;  %v839_v29 = vpop.f32.mrf.mxu1 }
 0x1a6   : > { %v670_v30 = vadd.f32 %v832_v26, %v501_v22  ;;  %v672_v31 = vadd.f32 %v838_v27, %v503_v24 }
 0x1a7   : > { %v834_v33 = vpop.f32.mrf.mxu0  ;;  %v840_v35 = vpop.f32.mrf.mxu1 }
 0x1a8   : > { %678 = vst [vmem:[#allocation2 + $0x18] sm:$0xff] %v670_v30  ;;  %680 = vst [vmem:[#allocation2 + $0x8] sm:$0xff] %v672_v31  ;;  %v835_v36 = vadd.f32 %v834_v33, %v833_v28  ;;  %v841_v37 = vadd.f32 %v840_v35, %v839_v29 }
 0x1a9   : > { %v842_v38 = vpop.f32.mrf.mxu1 }
 0x1aa   : > { %v671_v39 = vadd.f32 %v835_v36, %v502_v32  ;;  %v673_v40 = vadd.f32 %v841_v37, %v504_v34 }
 0x1ab   : > { %v843_v42 = vpop.f32.mrf.mxu1 }
 0x1ac   : > { %679 = vst [vmem:[#allocation2 + $0x10] sm:$0xff] %v671_v39  ;;  %681 = vst [vmem:[#allocation2 + $0x20] sm:$0xff] %v673_v40  ;;  %v844_v43 = vadd.f32 %v843_v42, %v842_v38 }
 0x1ad   : > { %v845_v44 = vpop.f32.mrf.mxu1 }
 0x1ae   : > { %v674_v45 = vadd.f32 %v844_v43, %v505_v41 }
 0x1af   : > { %v846_v47 = vpop.f32.mrf.mxu1 }
 0x1b0   : > { %682 = vst [vmem:[#allocation2 + $0x28] sm:$0xff] %v674_v45  ;;  %v847_v48 = vadd.f32 %v846_v47, %v845_v44  ;;  %687 = sbr.rel (%p803_p5) target bundleno = 447 (0x1bf), region = 44 }
 0x1b2   : > { %v675_v49 = vadd.f32 %v847_v48, %v506_v46 }
 0x1b4   : > { %683 = vst [vmem:[#allocation2 + $0x38] sm:$0xff] %v675_v49 }
 0x1b5   : > { %v688_v50 = vld [vmem:[%s1114_s0] sm:$0xff]  ;;  %v696_v51 = vld [vmem:[#allocation2 + $0x30] sm:$0xff]  ;;  %v689_v52 = vld [vmem:[%s1114_s0 + $0x8] sm:$0xff] }
 0x1b6   : > { %v704_v53 = vmul.f32 %v696_v51, %v688_v50  ;;  %v697_v54 = vld [vmem:[#allocation2] sm:$0xff]  ;;  %v690_v55 = vld [vmem:[%s1114_s0 + $0x10] sm:$0xff]  ;;  %v698_v56 = vld [vmem:[#allocation2 + $0x18] sm:$0xff] }
 0x1b7   : > { %v705_v57 = vmul.f32 %v697_v54, %v689_v52  ;;  %v706_v58 = vmul.f32 %v698_v56, %v690_v55  ;;  %v691_v59 = vld [vmem:[%s1114_s0 + $0x18] sm:$0xff]  ;;  %v699_v60 = vld [vmem:[#allocation2 + $0x10] sm:$0xff]  ;;  %v692_v61 = vld [vmem:[%s1114_s0 + $0x20] sm:$0xff] }
 0x1b8   : > { %712 = vst [vmem:[#allocation3] sm:$0xff] %v704_v53  ;;  %v707_v62 = vmul.f32 %v699_v60, %v691_v59  ;;  %v700_v63 = vld [vmem:[#allocation2 + $0x8] sm:$0xff]  ;;  %v701_v1 = vld [vmem:[#allocation2 + $0x20] sm:$0xff]  ;;  %v694_v4 = vld [vmem:[%s1114_s0 + $0x30] sm:$0xff] }
 0x1b9   : > { %v693_v0 = vld [vmem:[%s1114_s0 + $0x28] sm:$0xff]  ;;  %713 = vst [vmem:[#allocation3 + $0x8] sm:$0xff] %v705_v57  ;;  %714 = vst [vmem:[#allocation3 + $0x10] sm:$0xff] %v706_v58  ;;  %v708_v2 = vmul.f32 %v700_v63, %v692_v61  ;;  %v695_v6 = vld [vmem:[%s1114_s0 + $0x38] sm:$0xff] }
 0x1ba   : > { %v709_v3 = vmul.f32 %v701_v1, %v693_v0  ;;  %v702_v5 = vld [vmem:[#allocation2 + $0x28] sm:$0xff]  ;;  %715 = vst [vmem:[#allocation3 + $0x18] sm:$0xff] %v707_v62 }
 0x1bb   : > { %v710_v7 = vmul.f32 %v702_v5, %v694_v4  ;;  %v703_v8 = vld [vmem:[#allocation2 + $0x38] sm:$0xff]  ;;  %716 = vst [vmem:[#allocation3 + $0x20] sm:$0xff] %v708_v2 }
 0x1bc   : > { %717 = vst [vmem:[#allocation3 + $0x28] sm:$0xff] %v709_v3  ;;  %v711_v9 = vmul.f32 %v703_v8, %v695_v6 }
 0x1bd   : > { %718 = vst [vmem:[#allocation3 + $0x30] sm:$0xff] %v710_v7 }
 0x1be   : > { %719 = vst [vmem:[#allocation3 + $0x38] sm:$0xff] %v711_v9 }
 0x1bf PF: > { %p868_p6 = scmp.eq.s32.totalorder %s957_s16, 3  ;;  %s923_s20 = smov [#allocation3]  }
 0x1c0   : > { %s726_s21 = sshll.u32 %s923_s20, 4  ;;  %s727_s21 = int_to_ptr.vmem [resolvable:$true] %s726_s21 }
 0x1c1   : > { %s885_s22 = scalar_lea.vmem %s727_s21, 1024  ;;  %p892_p10 = scmp.lt.s32.totalorder %s727_s21, %s727_s21 }
 0x1c2   : > { %p886_p7 = scmp.ne.s32.totalorder %s727_s21, %s885_s22  ;;  %p893_p11 = scmp.lt.s32.totalorder %s885_s22, %s885_s22 }
 0x1c4   : > { %p887_p8 = pnand %p886_p7, %p868_p6  ;;  %p894_p12 = por %p893_p11, %p892_p10 }
 0x1c6   : > { %p888_p9 = pneg %p887_p8 }
 0x1c8   : > { %p895_p13 = pnand %p894_p12, %p888_p9 }
 0x1ca   : > { %898 = shalt.err (!%p895_p13)
}
 0x1cb   : > { %s924_s23 = smov 128   ;;  %s925_s24 = smov 8  }
 0x1cc   : > { %865 = dma.vmem_to_hbm [thread:$0]  (%p868_p6), %s727_s21, 1024, %s1118_s4, [#allocation4], %s924_s23, %s924_s23, %s925_s24  }
 0x1cd   : > { %914 = dma.done.wait (%p868_p6), [#allocation4], 1024  }
 0x1ce   : > { %916 = vsyncadd (%p868_p6), [#allocation4], 4294966272 }
 0x1cf PF: > { %s15_s15 = sadd.s32 1, %s919_s15  }
 0x1d0   : > { %p12_p0 = scmp.ge.s32.totalorder %s15_s15, 6  }
 0x1d2   :  { %14 = sbr.rel (!%p12_p0) target bundleno = 1 (0x1), region = 77 }
 0x1d7   :  { %742 = vsyncpa [#allocation4], 1 }
 0x1d8   :  { %744 = vsyncpa [#allocation4 + $0x1], 1 }

</bundles_post_ra>
